<compile_context>
chip_gen: v5e
topology: v5e:2x2
jax: 0.10.0
libtpu: 0.0.40
codegen_flags: <defaults>
</compile_context>

<pallas_src>
import functools

import jax
import jax.numpy as jnp
from jax import lax
from jax.experimental import pallas as pl
from jax.experimental.pallas import tpu as pltpu


NBLK = 3     # MSBlk1, MSBlk2, MSBlk_res
NSPD = 3     # SPADE layers per Multi_SPADE3 block
EPS = 1e-5   # torch.nn.InstanceNorm2d default


# ----------------------------------------------------------------------------
# Small helpers (plain JAX, outside the kernel)
# ----------------------------------------------------------------------------
def _leaky(x, slope=0.2):
    return jnp.where(x >= 0, x, slope * x)


def nearest_resize_nchw(seg, H, W):
    """PyTorch F.interpolate(mode='nearest'): src = floor(dst*in/out), NCHW."""
    N, C, Hs, Ws = seg.shape
    if (Hs, Ws) == (H, W):
        return seg
    idx_h = (jnp.arange(H) * Hs) // H
    idx_w = (jnp.arange(W) * Ws) // W
    return seg[:, :, idx_h][:, :, :, idx_w]


def _flatw(w):
    """HWIO (3,3,Cin,Cout) -> (9*Cin, Cout); row order = (ky, kx, cin)."""
    return w.reshape(-1, w.shape[-1])


@functools.lru_cache(maxsize=None)
def _roll_is_numpy_like():
    """Empirically pin down pltpu.roll's direction convention with a tiny
    probe kernel (numpy convention: roll(x, +1)[i] == x[i-1])."""
    def probe(x_ref, o_ref):
        o_ref[...] = pltpu.roll(x_ref[...], 1, axis=1)

    x = lax.broadcasted_iota(jnp.int32, (8, 128), 1)
    out = pl.pallas_call(
        probe, out_shape=jax.ShapeDtypeStruct((8, 128), jnp.int32))(x)
    return bool(int(out[0, 0]) == 127)


# ----------------------------------------------------------------------------
# Fused Pallas kernel: the whole Multi_SPADE_resblk3 forward, one batch element
# per grid step, channel-major (C, H*W) layout.
# ----------------------------------------------------------------------------
def _resblk3_kernel(x_ref, sc0_ref, sc1_ref, sc2_ref,
                    wsh0_ref, wsh1_ref, wsh2_ref, bsh_ref,
                    wgb_ref, bgb_ref, inw_ref, inb_ref,
                    wlast_ref, blast_ref,
                    o_ref, *, H, W, F, numpy_roll):
    HW = H * W
    f32 = jnp.float32
    bf16 = jnp.bfloat16
    seg_refs = (sc0_ref, sc1_ref, sc2_ref)
    wsh_refs = (wsh0_ref, wsh1_ref, wsh2_ref)

    # Flattened-pixel row/col indices -> halo-validity masks per 3x3 tap.
    flat = lax.broadcasted_iota(jnp.int32, (1, HW), 1)
    row = flat // W
    col = flat % W

    def _valid(ddy, ddx):
        m = None
        for c in ((row >= -ddy) if ddy < 0 else None,
                  (row < H - ddy) if ddy > 0 else None,
                  (col >= -ddx) if ddx < 0 else None,
                  (col < W - ddx) if ddx > 0 else None):
            if c is not None:
                m = c if m is None else jnp.logical_and(m, c)
        return m

    valid = {(dy, dx): _valid(dy, dx)
             for dy in (-1, 0, 1) for dx in (-1, 0, 1)}

    def taps(a):
        """a: (Cin, HW) f32 -> (9*Cin, HW) bf16 tap matrix of a 3x3 SAME conv.

        Lane rolls (XLU) produce the 9 shifted copies; the halo is zeroed via
        the precomputed masks, so no pad scratch / VMEM round trip is needed.
        """
        rows = []
        for ddy in (-1, 0, 1):
            for ddx in (-1, 0, 1):
                off = ddy * W + ddx                     # flat tap offset
                if off == 0:
                    t = a
                else:
                    s = (-off) % HW if numpy_roll else off % HW
                    t = pltpu.roll(a, s, axis=1)
                m = valid[(ddy, ddx)]
                if m is not None:
                    t = jnp.where(m, t, 0.0)
                rows.append(t)
        return jnp.concatenate(rows, axis=0).astype(bf16)

    # Seg tap matrices depend only on the labels -> build once, reuse in all
    # three Multi_SPADE3 blocks.
    seg_taps = [taps(seg_refs[i][0].astype(f32)) for i in range(NSPD)]

    def conv3x3(a_f32, w_cm, bias):
        """Single-dot conv: (Cout,9Cin)bf16 @ (9Cin,HW)bf16 -> (Cout,HW)f32."""
        return jnp.dot(w_cm, taps(a_f32), preferred_element_type=f32) + bias

    def spade(xv, b, i):
        s = b * NSPD + i
        # Fused InstanceNorm2d (biased variance, affine); stats in f32 over HW.
        mean = jnp.mean(xv, axis=1, keepdims=True)                      # (F,1)
        var = jnp.maximum(
            jnp.mean(xv * xv, axis=1, keepdims=True) - mean * mean, 0.0)
        scale = inw_ref[s] * lax.rsqrt(var + EPS)
        shift = inb_ref[s] - mean * scale
        norm = xv * scale + shift
        # mlp_shared: one dot on the cached seg taps, + LeakyReLU(0.2).
        actv = _leaky(jnp.dot(wsh_refs[i][b], seg_taps[i],
                              preferred_element_type=f32) + bsh_ref[s])
        # mlp_gamma + mlp_beta fused into one conv with Cout = 2F.
        gb = conv3x3(actv, wgb_ref[s], bgb_ref[s])                      # (2F,HW)
        return norm * (1.0 + gb[:F]) + gb[F:]

    def block(xv, b):
        for i in range(NSPD):
            xv = spade(xv, b, i)
        # last = LeakyReLU(0.2) -> Conv2d(3,1,1)
        return conv3x3(_leaky(xv), wlast_ref[b], blast_ref[b])

    x0 = x_ref[0].astype(f32)                 # (F, HW)
    x2 = block(block(x0, 0), 1)               # MSBlk1 -> MSBlk2
    xr = block(x0, 2)                         # MSBlk_res
    o_ref[0] = x2 + xr                        # fused residual add (lane-dense)


# ----------------------------------------------------------------------------
# Parameter packing: HWIO convs -> channel-major (Cout, 9*Cin) bf16 matrices
# ----------------------------------------------------------------------------
def _pack_params(params):
    bf16 = jnp.bfloat16
    blocks = [params["blk1"], params["blk2"], params["blk_res"]]
    F = blocks[0]["w_last"].shape[-1]

    def cm(w):                                   # -> (Cout, 9*Cin)
        return _flatw(w).T

    w_sh = [jnp.stack([cm(blocks[b]["spade"][i]["w_sh"]) for b in range(NBLK)]
                      ).astype(bf16) for i in range(NSPD)]   # 3 x (NBLK,F,9*ch_i)
    b_sh = jnp.stack([blocks[b]["spade"][i]["b_sh"].reshape(F, 1)
                      for b in range(NBLK) for i in range(NSPD)])      # (9,F,1)
    w_gb = jnp.stack([jnp.concatenate([cm(blocks[b]["spade"][i]["w_g"]),
                                       cm(blocks[b]["spade"][i]["w_b"])], axis=0)
                      for b in range(NBLK) for i in range(NSPD)]
                     ).astype(bf16)                                    # (9,2F,9F)
    b_gb = jnp.stack([jnp.concatenate([blocks[b]["spade"][i]["b_g"],
                                       blocks[b]["spade"][i]["b_b"]]).reshape(2 * F, 1)
                      for b in range(NBLK) for i in range(NSPD)])      # (9,2F,1)
    in_w = jnp.stack([blocks[b]["spade"][i]["in_w"].reshape(F, 1)
                      for b in range(NBLK) for i in range(NSPD)])      # (9,F,1)
    in_b = jnp.stack([blocks[b]["spade"][i]["in_b"].reshape(F, 1)
                      for b in range(NBLK) for i in range(NSPD)])      # (9,F,1)
    w_last = jnp.stack([cm(blocks[b]["w_last"]) for b in range(NBLK)]
                       ).astype(bf16)                                  # (NBLK,F,9F)
    b_last = jnp.stack([blocks[b]["b_last"].reshape(F, 1)
                        for b in range(NBLK)])                         # (NBLK,F,1)
    return w_sh, b_sh, w_gb, b_gb, in_w, in_b, w_last, b_last


# ----------------------------------------------------------------------------
# Public forward: NCHW in / NCHW out, single pallas_call, no transposes
# ----------------------------------------------------------------------------
def multi_spade_resblk3_forward(x_nchw, l1, l2, l3, params):
    return _forward(_roll_is_numpy_like(), x_nchw, l1, l2, l3, params)


@functools.partial(jax.jit, static_argnums=0)
def _forward(numpy_roll, x_nchw, l1, l2, l3, params):
    x = x_nchw.astype(jnp.float32)
    N, F, H, W = x.shape
    HW = H * W
    x_flat = x.reshape(N, F, HW)          # NCHW flattens straight to (C, HW)

    # Nearest-resize labels to x's spatial size (wrapper-side gather); the
    # 3x3 patch construction happens in-kernel.
    segs = [nearest_resize_nchw(l.astype(jnp.float32), H, W).reshape(N, -1, HW)
            for l in (l1, l2, l3)]

    w_sh, b_sh, w_gb, b_gb, in_w, in_b, w_last, b_last = _pack_params(params)
    consts = [w_sh[0], w_sh[1], w_sh[2], b_sh, w_gb, b_gb,
              in_w, in_b, w_last, b_last]

    def batched(shape_tail):
        zeros = (0,) * len(shape_tail)

        def imap(n):
            return (n,) + zeros
        return pl.BlockSpec((1,) + tuple(shape_tail), imap)

    def const(shape):
        zeros = (0,) * len(shape)

        def imap(n):
            return zeros
        return pl.BlockSpec(tuple(shape), imap)

    # Explicit scoped-VMEM budget: double-buffered per-step blocks + a generous
    # bound on in-kernel temporaries (tap matrices, gamma/beta, ...).
    per_step = (4 * x_flat.nbytes // N                     # x + out, 2-buffered
                + sum(2 * s.nbytes // N for s in segs)
                + sum(2 * c.nbytes for c in consts))
    temps = 16 * 9 * F * HW * 4
    vmem_limit = int(min(48 << 20, max(16 << 20, per_step + temps + (4 << 20))))

    kernel = functools.partial(_resblk3_kernel, H=H, W=W, F=F,
                               numpy_roll=numpy_roll)
    out = pl.pallas_call(
        kernel,
        out_shape=jax.ShapeDtypeStruct((N, F, HW), jnp.float32),
        grid=(N,),
        in_specs=[batched((F, HW)),
                  batched(segs[0].shape[1:]),
                  batched(segs[1].shape[1:]),
                  batched(segs[2].shape[1:])] + [const(c.shape) for c in consts],
        out_specs=batched((F, HW)),
        compiler_params=pltpu.CompilerParams(
            dimension_semantics=("parallel",),
            vmem_limit_bytes=vmem_limit),
    )(x_flat, segs[0], segs[1], segs[2], *consts)
    return out.reshape(N, F, H, W)


# ----------------------------------------------------------------------------
# Deterministic synthetic parameter init (shapes from the PyTorch __init__)
# ----------------------------------------------------------------------------
def init_params(key, ch, nfilt):
    def conv_p(k, cin, cout, scale=0.1):
        k1, k2 = jax.random.split(k)
        w = scale * jax.random.normal(k1, (3, 3, cin, cout), jnp.float32)
        b = scale * jax.random.normal(k2, (cout,), jnp.float32)
        return w, b

    def spade_p(k, cin):
        ks = jax.random.split(k, 5)
        w_sh, b_sh = conv_p(ks[0], cin, nfilt)
        w_g, b_g = conv_p(ks[1], nfilt, nfilt)
        w_b, b_b = conv_p(ks[2], nfilt, nfilt)
        in_w = 1.0 + 0.1 * jax.random.normal(ks[3], (nfilt,), jnp.float32)
        in_b = 0.1 * jax.random.normal(ks[4], (nfilt,), jnp.float32)
        return dict(w_sh=w_sh, b_sh=b_sh, w_g=w_g, b_g=b_g, w_b=w_b, b_b=b_b,
                    in_w=in_w, in_b=in_b)

    def blk_p(k):
        ks = jax.random.split(k, NSPD + 1)
        spades = [spade_p(ks[i], ch[i]) for i in range(NSPD)]
        w_last, b_last = conv_p(ks[NSPD], nfilt, nfilt)
        return dict(spade=spades, w_last=w_last, b_last=b_last)

    k1, k2, k3 = jax.random.split(key, 3)
    return dict(blk1=blk_p(k1), blk2=blk_p(k2), blk_res=blk_p(k3))


# ----------------------------------------------------------------------------
# Pure-JAX reference (f32 everywhere) for validating the fused Pallas path
# ----------------------------------------------------------------------------
def _ref_conv3x3(x, w, b):
    return lax.conv_general_dilated(
        x, w, (1, 1), "SAME",
        dimension_numbers=("NHWC", "HWIO", "NHWC")) + b


def _ref_spade(x, seg, p, eps=EPS):
    actv = _leaky(_ref_conv3x3(seg, p["w_sh"], p["b_sh"]))
    gamma = _ref_conv3x3(actv, p["w_g"], p["b_g"])
    beta = _ref_conv3x3(actv, p["w_b"], p["b_b"])
    mean = jnp.mean(x, axis=(1, 2), keepdims=True)
    var = jnp.mean((x - mean) ** 2, axis=(1, 2), keepdims=True)   # biased, as torch
    norm = (x - mean) * lax.rsqrt(var + eps) * p["in_w"] + p["in_b"]
    return norm * (1.0 + gamma) + beta


def _ref_blk(x, labels, p):
    for i in range(NSPD):
        x = _ref_spade(x, labels[i], p["spade"][i])
    return _ref_conv3x3(_leaky(x), p["w_last"], p["b_last"])


def ref_forward(x_nchw, l1, l2, l3, params):
    N, F, H, W = x_nchw.shape
    to_nhwc = lambda t: jnp.transpose(t, (0, 2, 3, 1))
    x = to_nhwc(x_nchw)
    labels = [to_nhwc(nearest_resize_nchw(l, H, W)) for l in (l1, l2, l3)]
    x2 = _ref_blk(x, labels, params["blk1"])
    x2 = _ref_blk(x2, labels, params["blk2"])
    xr = _ref_blk(x, labels, params["blk_res"])
    return jnp.transpose(x2 + xr, (0, 3, 1, 2))


# ----------------------------------------------------------------------------
if __name__ == "__main__":
    key = jax.random.PRNGKey(0)
    B, nfilt = 2, 8
    H = W = 16
    ch = (4, 3, 6)                  # ch1..ch3 (label channel counts)

    kx, k1, k2, k3, kp = jax.random.split(key, 5)
    x = jax.random.normal(kx, (B, nfilt, H, W), jnp.float32)    # NCHW like torch
    l1 = jax.random.normal(k1, (B, ch[0], 8, 8), jnp.float32)   # nearest-resized to 16x16
    l2 = jax.random.normal(k2, (B, ch[1], 16, 16), jnp.float32)
    l3 = jax.random.normal(k3, (B, ch[2], 8, 8), jnp.float32)
    params = init_params(kp, ch, nfilt)

    out = jax.block_until_ready(multi_spade_resblk3_forward(x, l1, l2, l3, params))
    assert out.shape == (B, nfilt, H, W) and out.dtype == jnp.float32

    ref = jax.block_until_ready(ref_forward(x, l1, l2, l3, params))

    # The kernel uses bf16 MXU matmuls with f32 accumulation (per the perf
    # review), chained through 8 conv stages, so validate with scale-normalized
    # max error and relative L2 rather than tight f32 elementwise tolerances.
    diff = out - ref
    max_err = float(jnp.max(jnp.abs(diff)))
    scale = float(jnp.max(jnp.abs(ref)))
    rel_l2 = float(jnp.linalg.norm(diff) / (jnp.linalg.norm(ref) + 1e-12))
    if not (max_err <= 5e-2 * max(scale, 1.0) and rel_l2 <= 2e-2):
        raise AssertionError(
            f"Pallas vs reference mismatch: max_err={max_err}, "
            f"ref_scale={scale}, rel_l2={rel_l2}")

    print("KERNEL_OK")
</pallas_src>

<mosaic_0001>
module attributes {stable_mosaic.version = 11 : i64} {
  func.func @probe(%arg0: memref<8x128xi32, #tpu.memory_space<vmem>>, %arg1: memref<8x128xi32, #tpu.memory_space<vmem>>) attributes {dimension_semantics = [], scalar_prefetch = 0 : i64, scratch_operands = 0 : i64, tpu.core_type = #tpu.core_type<tc>} {
    %c0 = arith.constant 0 : index
    %c0_0 = arith.constant 0 : index
    %0 = vector.load %arg0[%c0, %c0_0] : memref<8x128xi32, #tpu.memory_space<vmem>>, vector<8x128xi32>
    %c1_i32 = arith.constant 1 : i32
    %1 = tpu.dynamic_rotate %0 by %c1_i32 dim 1 : vector<8x128xi32>, i32 -> vector<8x128xi32>
    %c0_1 = arith.constant 0 : index
    %c0_2 = arith.constant 0 : index
    %2 = vector.load %arg1[%c0_1, %c0_2] : memref<8x128xi32, #tpu.memory_space<vmem>>, vector<8x128xi32>
    tpu.vector_store %arg1[%c0_1, %c0_2], %1 {strides = array<i32>} : memref<8x128xi32, #tpu.memory_space<vmem>>, vector<8x128xi32>,
    return
  }
}

</mosaic_0001>

<bundles_post_ra>
// kernel: tpu_custom_call.1
= control target key start
LH: loop header
LB: loop body
LE: loop exit
PB: predicated region body
PF: predicated region fallthrough
CT: control target
= control target key end

     0   :  { %6 = vsyncpa [#allocation3], 0  ;;  %s118_s0 = inlined_call_operand.hbm [shape: s32[8,128], index: 0, kind: input, shape index: {}]   ;;  %s119_s1 = inlined_call_operand.hbm [shape: s32[8,128], index: 1, kind: output, shape index: {}]  }
   0x1   :  { %7 = vsyncpa [#allocation4], 0  ;;  %s13_s8 = sshll.u32 %s118_s0, 4  ;;  %s99_s9 = smov [#allocation2]   ;;  %s14_s8 = int_to_ptr.hbm [resolvable:$true] %s13_s8 }
   0x2   :  { %s15_s10 = sshll.u32 %s99_s9, 4  ;;  %s16_s10 = int_to_ptr.vmem [resolvable:$true] %s15_s10 }
   0x3   :  { %18 = dma.hbm_to_vmem [thread:$0]  %s14_s8, 128, %s16_s10, [#allocation3]  }
   0x4   :  { %95 = dma.done.wait [#allocation3], 128  }
   0x5   :  { %96 = vsyncadd [#allocation3], 4294967168  ;;  %v23_v0 = vld [vmem:[#allocation2] sm:$0xff]  ;;  %s100_s11 = smov 1   ;;  %s101_s12 = smov [#allocation5]  }
   0x6   :  { %24 = vrot.lane.b32.xlu0 %v23_v0, %s100_s11  ;;  %s32_s13 = sshll.u32 %s101_s12, 4  ;;  %s34_s16 = sshll.u32 %s119_s1, 4  ;;  %s33_s13 = int_to_ptr.vmem [resolvable:$true] %s32_s13  ;;  %s35_s16 = int_to_ptr.hbm [resolvable:$true] %s34_s16 }
  0x78   :  { %v25_v1 = vpop.permute.xlu0 %24 }
  0x79   :  { %26 = vst [vmem:[#allocation5] sm:$0xff] %v25_v1 }
  0x7a   :  { %37 = dma.vmem_to_hbm [thread:$0]  %s33_s13, 128, %s35_s16, [#allocation4]  }
  0x7b   :  { %97 = dma.done.wait [#allocation4], 128  }
  0x7c   :  { %98 = vsyncadd [#allocation4], 4294967168 }
  0x7d   :  { %42 = vsyncpa [#allocation3], 1 }
  0x7e   :  { %43 = vsyncpa [#allocation4], 1 }

</bundles_post_ra>
